<compile_context>
chip_gen: v6e
topology: v6e:2x2x1
jax: 0.10.0
libtpu: 0.0.40
codegen_flags: <defaults>
</compile_context>

<pallas_src>
import jax
import jax.numpy as jnp
from jax import lax
from jax.experimental import pallas as pl
from jax.experimental.pallas import tpu as pltpu


# ---------------------------------------------------------------------------
# Hardware / tiling helpers
# ---------------------------------------------------------------------------

def _tpu_vmem_capacity():
    try:
        info = pltpu.get_tpu_info()
        cap = getattr(info, "vmem_capacity_bytes", None)
        if cap:
            return int(cap)
    except Exception:
        pass
    return 64 * 1024 * 1024  # conservative (v7x per-core VMEM)


def _compiler_params(n_grid_axes, vmem_est_bytes):
    kwargs = dict(dimension_semantics=("parallel",) * n_grid_axes)
    if vmem_est_bytes > (32 << 20):
        cap = _tpu_vmem_capacity()
        limit = min(int(vmem_est_bytes * 5 // 4), int(cap * 3 // 4))
        kwargs["vmem_limit_bytes"] = max(limit, 32 << 20)
    return pltpu.CompilerParams(**kwargs)


def _largest_divisor_at_most(n, cap):
    cap = max(1, min(n, int(cap)))
    for d in range(cap, 0, -1):
        if n % d == 0:
            return d
    return 1


def _pick_bb(B, per_image_bytes, budget_bytes, other_steps):
    """Images per grid step: big enough to amortize step overhead, small enough
    for VMEM / compile-time, and keep >=2 grid steps for v7x megacore when the
    blocks are already sizable."""
    cap = min(8, max(1, budget_bytes // max(per_image_bytes, 1)))
    bb = _largest_divisor_at_most(B, cap)
    if (B // bb) * other_steps < 2 and B > 1 and per_image_bytes >= (128 << 10):
        bb = _largest_divisor_at_most(B, max(1, B // 2))
    return bb


def _scratch_dtype(dtype):
    return jnp.bfloat16 if dtype == jnp.bfloat16 else jnp.float32


# ---------------------------------------------------------------------------
# Kernels
# ---------------------------------------------------------------------------

def _dwconv_flat_kernel(x_ref, w_ref, b_ref, o_ref, xp_ref):
    """Small-C path: channels folded into the lane axis, whole image per image.

    x_ref : (BB, H, W*C)           input block (orig dtype)
    w_ref : (3, 3, W*C)   f32      weight[dy, dx, :] tiled W times along lanes
    b_ref : (1, W*C)      f32      bias tiled W times along lanes
    o_ref : (BB, H, W*C)           output block
    xp_ref: (BB, H+2, (W+2)*C)     zero-padded scratch (f32, or bf16 for bf16 in)
    """
    BB, H, WC = o_ref.shape
    WP = xp_ref.shape[2]
    C = (WP - WC) // 2
    sdt = xp_ref.dtype

    # Build the zero halo + interior in VMEM (single HBM->VMEM trip for x).
    xp_ref[:, 0:1, :] = jnp.zeros((BB, 1, WP), sdt)
    xp_ref[:, H + 1:H + 2, :] = jnp.zeros((BB, 1, WP), sdt)
    xp_ref[:, :, 0:C] = jnp.zeros((BB, H + 2, C), sdt)
    xp_ref[:, :, C + WC:WP] = jnp.zeros((BB, H + 2, C), sdt)
    xp_ref[:, 1:H + 1, C:C + WC] = x_ref[...].astype(sdt)

    # 9 shifted MACs per image; per-image accumulator keeps the live set small.
    for bb in range(BB):
        acc = jnp.broadcast_to(b_ref[0, :], (H, WC))        # f32, bias-initialized
        for dy in range(3):
            for dx in range(3):
                win = xp_ref[bb, dy:dy + H, dx * C:dx * C + WC]   # direct ref window
                acc = acc + win * w_ref[dy, dx, :]
        o_ref[bb, :, :] = acc.astype(o_ref.dtype)


def _dwconv_tiled_kernel(x_ref, xt_ref, xb_ref, w_ref, b_ref, o_ref, xp_ref):
    """Channel-tiled + H-band path (lane axis = one channel tile).

    x_ref : (BB, HB, W, TC)        main row band (orig dtype)
    xt_ref: (BB, 1, W, TC)         row just above the band (clamped index)
    xb_ref: (BB, 1, W, TC)         row just below the band (clamped index)
    w_ref : (3, 3, TC)    f32      depthwise filter slice
    b_ref : (1, TC)       f32      bias slice
    o_ref : (BB, HB, W, TC)        output band
    xp_ref: (BB, HB+2, W+2, TC)    zero-padded scratch (f32 or bf16)
    """
    BB, HB, W, TC = o_ref.shape
    sdt = xp_ref.dtype
    hb = pl.program_id(2)
    n_hb = pl.num_programs(2)

    # Left/right column halos (rebuilt every step -> no cross-step state, so all
    # grid axes stay "parallel" and megacore sharding is always safe).
    xp_ref[:, :, 0:1, :] = jnp.zeros((BB, HB + 2, 1, TC), sdt)
    xp_ref[:, :, W + 1:W + 2, :] = jnp.zeros((BB, HB + 2, 1, TC), sdt)
    # Interior: single cast of the band.
    xp_ref[:, 1:HB + 1, 1:W + 1, :] = x_ref[...].astype(sdt)

    # Top halo row: zero on the first band, else the neighbouring row.
    @pl.when(hb == 0)
    def _():
        xp_ref[:, 0:1, 1:W + 1, :] = jnp.zeros((BB, 1, W, TC), sdt)

    @pl.when(hb > 0)
    def _():
        xp_ref[:, 0:1, 1:W + 1, :] = xt_ref[...].astype(sdt)

    # Bottom halo row.
    @pl.when(hb == n_hb - 1)
    def _():
        xp_ref[:, HB + 1:HB + 2, 1:W + 1, :] = jnp.zeros((BB, 1, W, TC), sdt)

    @pl.when(hb < n_hb - 1)
    def _():
        xp_ref[:, HB + 1:HB + 2, 1:W + 1, :] = xb_ref[...].astype(sdt)

    # 9 shifted MACs per image in the block.
    for bb in range(BB):
        acc = jnp.broadcast_to(b_ref[0, :], (HB, W, TC))     # f32, bias-initialized
        for dy in range(3):
            for dx in range(3):
                win = xp_ref[bb, dy:dy + HB, dx:dx + W, :]   # direct ref window
                acc = acc + win * w_ref[dy, dx, :]
        o_ref[bb, :, :, :] = acc.astype(o_ref.dtype)


# ---------------------------------------------------------------------------
# Wrappers
# ---------------------------------------------------------------------------

def _dwconv_flat(x, w32, b32, H, W):
    B, N, C = x.shape
    WC = W * C
    WP = (W + 2) * C
    sdt = _scratch_dtype(x.dtype)
    sbytes = jnp.dtype(sdt).itemsize
    itemsize = jnp.dtype(x.dtype).itemsize

    x_f = x.reshape(B, H, WC)                                     # free reshape
    w_f = jnp.tile(w32[:, :, None, :], (1, 1, W, 1)).reshape(3, 3, WC)
    b_f = jnp.tile(b32, W).reshape(1, WC)

    per_img = (H + 2) * WP * sbytes + 2 * 2 * H * WC * itemsize   # scratch + dbl-buf io
    BB = _pick_bb(B, per_img, 4 << 20, 1)
    vmem_est = BB * per_img + 10 * WC * 4

    out = pl.pallas_call(
        _dwconv_flat_kernel,
        out_shape=jax.ShapeDtypeStruct((B, H, WC), x.dtype),
        grid_spec=pltpu.PrefetchScalarGridSpec(
            num_scalar_prefetch=0,
            grid=(B // BB,),
            in_specs=[
                pl.BlockSpec((BB, H, WC), lambda b: (b, 0, 0)),
                pl.BlockSpec((3, 3, WC), lambda b: (0, 0, 0)),
                pl.BlockSpec((1, WC), lambda b: (0, 0)),
            ],
            out_specs=pl.BlockSpec((BB, H, WC), lambda b: (b, 0, 0)),
            scratch_shapes=[pltpu.VMEM((BB, H + 2, WP), sdt)],
        ),
        compiler_params=_compiler_params(1, vmem_est),
    )(x_f, w_f, b_f)
    return out.reshape(B, N, C)


def _dwconv_tiled(x, w32, b32, H, W):
    B, N, C = x.shape
    assert C % 128 == 0
    cap = _tpu_vmem_capacity()

    # Generation-aware channel tile: larger on v5e/v6e (128 MiB VMEM) than v7x.
    tc_pref = 512 if cap > (80 << 20) else 256
    tc = 128
    t = 128
    while t <= min(C, tc_pref):
        if C % t == 0:
            tc = t
        t += 128
    n_ct = C // tc

    sdt = _scratch_dtype(x.dtype)
    sbytes = jnp.dtype(sdt).itemsize
    itemsize = jnp.dtype(x.dtype).itemsize
    budget = min(24 << 20, cap // 4)

    def step_bytes(hb, bb):
        scr = bb * (hb + 2) * (W + 2) * tc * sbytes
        blk = 2 * 2 * bb * hb * W * tc * itemsize          # in + out, double-buffered
        halo = 2 * 2 * bb * W * tc * itemsize              # top/bottom halo rows
        return scr + blk + halo

    # Row band: keep the per-image accumulator ~<=16 vregs and VMEM in budget.
    hb_cap = min(H, max(1, 16384 // (W * tc)))
    HB = 1
    for d in range(1, H + 1):
        if H % d == 0 and d <= hb_cap and step_bytes(d, 1) <= budget:
            HB = d
    n_hb = H // HB

    per_img = step_bytes(HB, 1)
    BB = _pick_bb(B, per_img, budget, n_ct * n_hb)
    vmem_est = step_bytes(HB, BB) + 10 * tc * 4

    x4 = x.reshape(B, H, W, C)                                    # free reshape
    b2 = b32.reshape(1, C)

    main_spec = pl.BlockSpec((BB, HB, W, tc), lambda b, c, h: (b, h, 0, c))
    # Halo rows: block size 1 along H -> block index == row index; clamp at the
    # image border (the kernel zeroes the halo there instead).
    top_spec = pl.BlockSpec(
        (BB, 1, W, tc), lambda b, c, h: (b, jnp.maximum(h * HB - 1, 0), 0, c))
    bot_spec = pl.BlockSpec(
        (BB, 1, W, tc), lambda b, c, h: (b, jnp.minimum(h * HB + HB, H - 1), 0, c))

    out = pl.pallas_call(
        _dwconv_tiled_kernel,
        out_shape=jax.ShapeDtypeStruct((B, H, W, C), x.dtype),
        grid_spec=pltpu.PrefetchScalarGridSpec(
            num_scalar_prefetch=0,
            grid=(B // BB, n_ct, n_hb),
            in_specs=[
                main_spec, top_spec, bot_spec,
                pl.BlockSpec((3, 3, tc), lambda b, c, h: (0, 0, c)),
                pl.BlockSpec((1, tc), lambda b, c, h: (0, c)),
            ],
            out_specs=pl.BlockSpec((BB, HB, W, tc), lambda b, c, h: (b, h, 0, c)),
            scratch_shapes=[pltpu.VMEM((BB, HB + 2, W + 2, tc), sdt)],
        ),
        compiler_params=_compiler_params(3, vmem_est),
    )(x4, x4, x4, w32, b2)
    return out.reshape(B, N, C)


def dwconv_pallas(x, weight, bias, H, W):
    """x: (B, N, C) with N == H*W; weight: (3, 3, C); bias: (C,).

    Returns (B, N, C), matching DWConv.forward(x, H, W)."""
    B, N, C = x.shape
    assert N == H * W
    w32 = weight.astype(jnp.float32)
    b32 = bias.astype(jnp.float32)

    if C % 128 == 0:
        return _dwconv_tiled(x, w32, b32, H, W)

    # Small-C lane-folded path: only when the output stays lane-dense and the
    # whole-image accumulator stays small (<= ~16 vregs).
    if (W * C) % 128 == 0 and H * W * C <= 16 * 1024:
        return _dwconv_flat(x, w32, b32, H, W)

    # Fallback: pad channels to a multiple of 128 and use the banded tiled path.
    # TODO(synk): a band-tiled lane-folded path would avoid the padded-channel
    # HBM/compute overhead for large small-C images.
    cp = ((C + 127) // 128) * 128
    xpad = jnp.pad(x, ((0, 0), (0, 0), (0, cp - C)))
    wpad = jnp.pad(w32, ((0, 0), (0, 0), (0, cp - C)))
    bpad = jnp.pad(b32, ((0, cp - C),))
    out = _dwconv_tiled(xpad, wpad, bpad, H, W)
    return out[:, :, :C]


# ---------------------------------------------------------------------------
# Reference + test
# ---------------------------------------------------------------------------

def dwconv_reference(x, weight, bias, H, W):
    """Pure-JAX reference using lax depthwise conv (NCHW, like PyTorch)."""
    B, N, C = x.shape
    x_nchw = jnp.transpose(x, (0, 2, 1)).reshape(B, C, H, W)
    w_oihw = jnp.transpose(weight, (2, 0, 1))[:, None, :, :]      # (C,1,3,3)
    y = lax.conv_general_dilated(
        x_nchw, w_oihw,
        window_strides=(1, 1), padding=((1, 1), (1, 1)),
        dimension_numbers=("NCHW", "OIHW", "NCHW"),
        feature_group_count=C,
        precision=lax.Precision.HIGHEST)
    y = y + bias[None, :, None, None]
    return jnp.transpose(y.reshape(B, C, N), (0, 2, 1))


def _run_case(B, C, Hs, Ws, key):
    N = Hs * Ws
    kx, kw, kb = jax.random.split(key, 3)
    x = jax.random.normal(kx, (B, N, C), dtype=jnp.float32)
    weight = jax.random.normal(kw, (3, 3, C), dtype=jnp.float32) * 0.1
    bias = jax.random.normal(kb, (C,), dtype=jnp.float32) * 0.1

    out = jax.block_until_ready(dwconv_pallas(x, weight, bias, Hs, Ws))
    ref = dwconv_reference(x, weight, bias, Hs, Ws)
    assert out.shape == (B, N, C)
    err = float(jnp.max(jnp.abs(out - ref)))
    assert err < 2e-5, f"max abs err {err} (B={B}, C={C}, H={Hs}, W={Ws})"


if __name__ == "__main__":
    key = jax.random.PRNGKey(0)
    k1, k2, k3 = jax.random.split(key, 3)
    # Small-C lane-folded path: B=2, H=W=8, C=32 (W*C = 256, lane-dense).
    _run_case(2, 32, 8, 8, k1)
    # Channel-tiled path (C % 128 == 0, generation-aware tc): B=2, C=256.
    _run_case(2, 256, 8, 8, k2)
    # H-band tiled path (multiple row bands, halo rows from neighbour bands).
    _run_case(1, 128, 64, 8, k3)
    print("KERNEL_OK")
</pallas_src>

<mosaic_0001>
module attributes {stable_mosaic.version = 11 : i64} {
  func.func @_dwconv_flat_kernel(%arg0: i32, %arg1: memref<2x8x256xf32, #tpu.memory_space<vmem>>, %arg2: memref<3x3x256xf32, #tpu.memory_space<vmem>>, %arg3: memref<1x256xf32, #tpu.memory_space<vmem>>, %arg4: memref<2x8x256xf32, #tpu.memory_space<vmem>>, %arg5: memref<2x10x320xf32, #tpu.memory_space<vmem>>) attributes {dimension_semantics = [#tpu.dimension_semantics<parallel>], iteration_bounds = array<i64: 1>, scalar_prefetch = 0 : i64, scratch_operands = 1 : i64, tpu.core_type = #tpu.core_type<tc>, window_params = [{transform_indices = @transform_0, window_bounds = array<i64: 2, 8, 256>}, {pipeline_mode = #tpu.pipeline_mode<synchronous>, transform_indices = @transform_1, window_bounds = array<i64: 3, 3, 256>}, {pipeline_mode = #tpu.pipeline_mode<synchronous>, transform_indices = @transform_2, window_bounds = array<i64: 1, 256>}, {transform_indices = @transform_3, window_bounds = array<i64: 2, 8, 256>}]} {
    %cst = arith.constant 0.000000e+00 : f32
    %0 = vector.broadcast %cst : f32 to vector<2x1x320xf32>
    %c0 = arith.constant 0 : index
    %c0_0 = arith.constant 0 : index
    %c0_1 = arith.constant 0 : index
    %1 = vector.load %arg5[%c0, %c0_0, %c0_1] : memref<2x10x320xf32, #tpu.memory_space<vmem>>, vector<2x1x320xf32>
    tpu.vector_store %arg5[%c0, %c0_0, %c0_1], %0 {strides = array<i32>} : memref<2x10x320xf32, #tpu.memory_space<vmem>>, vector<2x1x320xf32>,
    %cst_2 = arith.constant 0.000000e+00 : f32
    %2 = vector.broadcast %cst_2 : f32 to vector<2x1x320xf32>
    %c0_3 = arith.constant 0 : index
    %c9 = arith.constant 9 : index
    %c0_4 = arith.constant 0 : index
    %3 = vector.load %arg5[%c0_3, %c9, %c0_4] : memref<2x10x320xf32, #tpu.memory_space<vmem>>, vector<2x1x320xf32>
    tpu.vector_store %arg5[%c0_3, %c9, %c0_4], %2 {strides = array<i32>} : memref<2x10x320xf32, #tpu.memory_space<vmem>>, vector<2x1x320xf32>,
    %cst_5 = arith.constant 0.000000e+00 : f32
    %4 = vector.broadcast %cst_5 : f32 to vector<2x10x32xf32>
    %c0_6 = arith.constant 0 : index
    %c0_7 = arith.constant 0 : index
    %c0_8 = arith.constant 0 : index
    %5 = vector.load %arg5[%c0_6, %c0_7, %c0_8] : memref<2x10x320xf32, #tpu.memory_space<vmem>>, vector<2x10x32xf32>
    tpu.vector_store %arg5[%c0_6, %c0_7, %c0_8], %4 {strides = array<i32>} : memref<2x10x320xf32, #tpu.memory_space<vmem>>, vector<2x10x32xf32>,
    %cst_9 = arith.constant 0.000000e+00 : f32
    %6 = vector.broadcast %cst_9 : f32 to vector<2x10x32xf32>
    %c0_10 = arith.constant 0 : index
    %c0_11 = arith.constant 0 : index
    %c288 = arith.constant 288 : index
    %7 = vector.load %arg5[%c0_10, %c0_11, %c288] : memref<2x10x320xf32, #tpu.memory_space<vmem>>, vector<2x10x32xf32>
    tpu.vector_store %arg5[%c0_10, %c0_11, %c288], %6 {strides = array<i32>} : memref<2x10x320xf32, #tpu.memory_space<vmem>>, vector<2x10x32xf32>,
    %c0_12 = arith.constant 0 : index
    %c0_13 = arith.constant 0 : index
    %c0_14 = arith.constant 0 : index
    %8 = vector.load %arg1[%c0_12, %c0_13, %c0_14] : memref<2x8x256xf32, #tpu.memory_space<vmem>>, vector<2x8x256xf32>
    %c0_15 = arith.constant 0 : index
    %c1 = arith.constant 1 : index
    %c32 = arith.constant 32 : index
    %9 = vector.load %arg5[%c0_15, %c1, %c32] : memref<2x10x320xf32, #tpu.memory_space<vmem>>, vector<2x8x256xf32>
    tpu.vector_store %arg5[%c0_15, %c1, %c32], %8 {strides = array<i32>} : memref<2x10x320xf32, #tpu.memory_space<vmem>>, vector<2x8x256xf32>,
    %c0_16 = arith.constant 0 : index
    %c0_17 = arith.constant 0 : index
    %10 = vector.load %arg3[%c0_16, %c0_17] : memref<1x256xf32, #tpu.memory_space<vmem>>, vector<1x256xf32>
    %11 = vector.shape_cast %10 : vector<1x256xf32> to vector<256xf32>
    %12 = vector.shape_cast %11 : vector<256xf32> to vector<1x256xf32>
    %13 = vector.broadcast %12 : vector<1x256xf32> to vector<8x256xf32>
    %c0_18 = arith.constant 0 : index
    %c0_19 = arith.constant 0 : index
    %c0_20 = arith.constant 0 : index
    %14 = vector.load %arg5[%c0_18, %c0_19, %c0_20] : memref<2x10x320xf32, #tpu.memory_space<vmem>>, vector<1x8x256xf32>
    %15 = vector.shape_cast %14 : vector<1x8x256xf32> to vector<8x256xf32>
    %c0_21 = arith.constant 0 : index
    %c0_22 = arith.constant 0 : index
    %c0_23 = arith.constant 0 : index
    %16 = vector.load %arg2[%c0_21, %c0_22, %c0_23] : memref<3x3x256xf32, #tpu.memory_space<vmem>>, vector<1x1x256xf32>
    %17 = vector.shape_cast %16 : vector<1x1x256xf32> to vector<256xf32>
    %18 = vector.shape_cast %17 : vector<256xf32> to vector<1x256xf32>
    %19 = vector.broadcast %18 : vector<1x256xf32> to vector<8x256xf32>
    %20 = arith.mulf %15, %19 : vector<8x256xf32>
    %21 = arith.addf %13, %20 : vector<8x256xf32>
    %c0_24 = arith.constant 0 : index
    %c0_25 = arith.constant 0 : index
    %c32_26 = arith.constant 32 : index
    %22 = vector.load %arg5[%c0_24, %c0_25, %c32_26] : memref<2x10x320xf32, #tpu.memory_space<vmem>>, vector<1x8x256xf32>
    %23 = vector.shape_cast %22 : vector<1x8x256xf32> to vector<8x256xf32>
    %c0_27 = arith.constant 0 : index
    %c1_28 = arith.constant 1 : index
    %c0_29 = arith.constant 0 : index
    %24 = vector.load %arg2[%c0_27, %c1_28, %c0_29] : memref<3x3x256xf32, #tpu.memory_space<vmem>>, vector<1x1x256xf32>
    %25 = vector.shape_cast %24 : vector<1x1x256xf32> to vector<256xf32>
    %26 = vector.shape_cast %25 : vector<256xf32> to vector<1x256xf32>
    %27 = vector.broadcast %26 : vector<1x256xf32> to vector<8x256xf32>
    %28 = arith.mulf %23, %27 : vector<8x256xf32>
    %29 = arith.addf %21, %28 : vector<8x256xf32>
    %c0_30 = arith.constant 0 : index
    %c0_31 = arith.constant 0 : index
    %c64 = arith.constant 64 : index
    %30 = vector.load %arg5[%c0_30, %c0_31, %c64] : memref<2x10x320xf32, #tpu.memory_space<vmem>>, vector<1x8x256xf32>
    %31 = vector.shape_cast %30 : vector<1x8x256xf32> to vector<8x256xf32>
    %c0_32 = arith.constant 0 : index
    %c2 = arith.constant 2 : index
    %c0_33 = arith.constant 0 : index
    %32 = vector.load %arg2[%c0_32, %c2, %c0_33] : memref<3x3x256xf32, #tpu.memory_space<vmem>>, vector<1x1x256xf32>
    %33 = vector.shape_cast %32 : vector<1x1x256xf32> to vector<256xf32>
    %34 = vector.shape_cast %33 : vector<256xf32> to vector<1x256xf32>
    %35 = vector.broadcast %34 : vector<1x256xf32> to vector<8x256xf32>
    %36 = arith.mulf %31, %35 : vector<8x256xf32>
    %37 = arith.addf %29, %36 : vector<8x256xf32>
    %c0_34 = arith.constant 0 : index
    %c1_35 = arith.constant 1 : index
    %c0_36 = arith.constant 0 : index
    %38 = vector.load %arg5[%c0_34, %c1_35, %c0_36] : memref<2x10x320xf32, #tpu.memory_space<vmem>>, vector<1x8x256xf32>
    %39 = vector.shape_cast %38 : vector<1x8x256xf32> to vector<8x256xf32>
    %c1_37 = arith.constant 1 : index
    %c0_38 = arith.constant 0 : index
    %c0_39 = arith.constant 0 : index
    %40 = vector.load %arg2[%c1_37, %c0_38, %c0_39] : memref<3x3x256xf32, #tpu.memory_space<vmem>>, vector<1x1x256xf32>
    %41 = vector.shape_cast %40 : vector<1x1x256xf32> to vector<256xf32>
    %42 = vector.shape_cast %41 : vector<256xf32> to vector<1x256xf32>
    %43 = vector.broadcast %42 : vector<1x256xf32> to vector<8x256xf32>
    %44 = arith.mulf %39, %43 : vector<8x256xf32>
    %45 = arith.addf %37, %44 : vector<8x256xf32>
    %c0_40 = arith.constant 0 : index
    %c1_41 = arith.constant 1 : index
    %c32_42 = arith.constant 32 : index
    %46 = vector.load %arg5[%c0_40, %c1_41, %c32_42] : memref<2x10x320xf32, #tpu.memory_space<vmem>>, vector<1x8x256xf32>
    %47 = vector.shape_cast %46 : vector<1x8x256xf32> to vector<8x256xf32>
    %c1_43 = arith.constant 1 : index
    %c1_44 = arith.constant 1 : index
    %c0_45 = arith.constant 0 : index
    %48 = vector.load %arg2[%c1_43, %c1_44, %c0_45] : memref<3x3x256xf32, #tpu.memory_space<vmem>>, vector<1x1x256xf32>
    %49 = vector.shape_cast %48 : vector<1x1x256xf32> to vector<256xf32>
    %50 = vector.shape_cast %49 : vector<256xf32> to vector<1x256xf32>
    %51 = vector.broadcast %50 : vector<1x256xf32> to vector<8x256xf32>
    %52 = arith.mulf %47, %51 : vector<8x256xf32>
    %53 = arith.addf %45, %52 : vector<8x256xf32>
    %c0_46 = arith.constant 0 : index
    %c1_47 = arith.constant 1 : index
    %c64_48 = arith.constant 64 : index
    %54 = vector.load %arg5[%c0_46, %c1_47, %c64_48] : memref<2x10x320xf32, #tpu.memory_space<vmem>>, vector<1x8x256xf32>
    %55 = vector.shape_cast %54 : vector<1x8x256xf32> to vector<8x256xf32>
    %c1_49 = arith.constant 1 : index
    %c2_50 = arith.constant 2 : index
    %c0_51 = arith.constant 0 : index
    %56 = vector.load %arg2[%c1_49, %c2_50, %c0_51] : memref<3x3x256xf32, #tpu.memory_space<vmem>>, vector<1x1x256xf32>
    %57 = vector.shape_cast %56 : vector<1x1x256xf32> to vector<256xf32>
    %58 = vector.shape_cast %57 : vector<256xf32> to vector<1x256xf32>
    %59 = vector.broadcast %58 : vector<1x256xf32> to vector<8x256xf32>
    %60 = arith.mulf %55, %59 : vector<8x256xf32>
    %61 = arith.addf %53, %60 : vector<8x256xf32>
    %c0_52 = arith.constant 0 : index
    %c2_53 = arith.constant 2 : index
    %c0_54 = arith.constant 0 : index
    %62 = vector.load %arg5[%c0_52, %c2_53, %c0_54] : memref<2x10x320xf32, #tpu.memory_space<vmem>>, vector<1x8x256xf32>
    %63 = vector.shape_cast %62 : vector<1x8x256xf32> to vector<8x256xf32>
    %c2_55 = arith.constant 2 : index
    %c0_56 = arith.constant 0 : index
    %c0_57 = arith.constant 0 : index
    %64 = vector.load %arg2[%c2_55, %c0_56, %c0_57] : memref<3x3x256xf32, #tpu.memory_space<vmem>>, vector<1x1x256xf32>
    %65 = vector.shape_cast %64 : vector<1x1x256xf32> to vector<256xf32>
    %66 = vector.shape_cast %65 : vector<256xf32> to vector<1x256xf32>
    %67 = vector.broadcast %66 : vector<1x256xf32> to vector<8x256xf32>
    %68 = arith.mulf %63, %67 : vector<8x256xf32>
    %69 = arith.addf %61, %68 : vector<8x256xf32>
    %c0_58 = arith.constant 0 : index
    %c2_59 = arith.constant 2 : index
    %c32_60 = arith.constant 32 : index
    %70 = vector.load %arg5[%c0_58, %c2_59, %c32_60] : memref<2x10x320xf32, #tpu.memory_space<vmem>>, vector<1x8x256xf32>
    %71 = vector.shape_cast %70 : vector<1x8x256xf32> to vector<8x256xf32>
    %c2_61 = arith.constant 2 : index
    %c1_62 = arith.constant 1 : index
    %c0_63 = arith.constant 0 : index
    %72 = vector.load %arg2[%c2_61, %c1_62, %c0_63] : memref<3x3x256xf32, #tpu.memory_space<vmem>>, vector<1x1x256xf32>
    %73 = vector.shape_cast %72 : vector<1x1x256xf32> to vector<256xf32>
    %74 = vector.shape_cast %73 : vector<256xf32> to vector<1x256xf32>
    %75 = vector.broadcast %74 : vector<1x256xf32> to vector<8x256xf32>
    %76 = arith.mulf %71, %75 : vector<8x256xf32>
    %77 = arith.addf %69, %76 : vector<8x256xf32>
    %c0_64 = arith.constant 0 : index
    %c2_65 = arith.constant 2 : index
    %c64_66 = arith.constant 64 : index
    %78 = vector.load %arg5[%c0_64, %c2_65, %c64_66] : memref<2x10x320xf32, #tpu.memory_space<vmem>>, vector<1x8x256xf32>
    %79 = vector.shape_cast %78 : vector<1x8x256xf32> to vector<8x256xf32>
    %c2_67 = arith.constant 2 : index
    %c2_68 = arith.constant 2 : index
    %c0_69 = arith.constant 0 : index
    %80 = vector.load %arg2[%c2_67, %c2_68, %c0_69] : memref<3x3x256xf32, #tpu.memory_space<vmem>>, vector<1x1x256xf32>
    %81 = vector.shape_cast %80 : vector<1x1x256xf32> to vector<256xf32>
    %82 = vector.shape_cast %81 : vector<256xf32> to vector<1x256xf32>
    %83 = vector.broadcast %82 : vector<1x256xf32> to vector<8x256xf32>
    %84 = arith.mulf %79, %83 : vector<8x256xf32>
    %85 = arith.addf %77, %84 : vector<8x256xf32>
    %c0_70 = arith.constant 0 : index
    %c0_71 = arith.constant 0 : index
    %c0_72 = arith.constant 0 : index
    %86 = vector.load %arg4[%c0_70, %c0_71, %c0_72] : memref<2x8x256xf32, #tpu.memory_space<vmem>>, vector<1x8x256xf32>
    %87 = vector.shape_cast %86 : vector<1x8x256xf32> to vector<8x256xf32>
    %88 = vector.shape_cast %85 : vector<8x256xf32> to vector<1x8x256xf32>
    tpu.vector_store %arg4[%c0_70, %c0_71, %c0_72], %88 {strides = array<i32>} : memref<2x8x256xf32, #tpu.memory_space<vmem>>, vector<1x8x256xf32>,
    %c0_73 = arith.constant 0 : index
    %c0_74 = arith.constant 0 : index
    %89 = vector.load %arg3[%c0_73, %c0_74] : memref<1x256xf32, #tpu.memory_space<vmem>>, vector<1x256xf32>
    %90 = vector.shape_cast %89 : vector<1x256xf32> to vector<256xf32>
    %91 = vector.shape_cast %90 : vector<256xf32> to vector<1x256xf32>
    %92 = vector.broadcast %91 : vector<1x256xf32> to vector<8x256xf32>
    %c1_75 = arith.constant 1 : index
    %c0_76 = arith.constant 0 : index
    %c0_77 = arith.constant 0 : index
    %93 = vector.load %arg5[%c1_75, %c0_76, %c0_77] : memref<2x10x320xf32, #tpu.memory_space<vmem>>, vector<1x8x256xf32>
    %94 = vector.shape_cast %93 : vector<1x8x256xf32> to vector<8x256xf32>
    %c0_78 = arith.constant 0 : index
    %c0_79 = arith.constant 0 : index
    %c0_80 = arith.constant 0 : index
    %95 = vector.load %arg2[%c0_78, %c0_79, %c0_80] : memref<3x3x256xf32, #tpu.memory_space<vmem>>, vector<1x1x256xf32>
    %96 = vector.shape_cast %95 : vector<1x1x256xf32> to vector<256xf32>
    %97 = vector.shape_cast %96 : vector<256xf32> to vector<1x256xf32>
    %98 = vector.broadcast %97 : vector<1x256xf32> to vector<8x256xf32>
    %99 = arith.mulf %94, %98 : vector<8x256xf32>
    %100 = arith.addf %92, %99 : vector<8x256xf32>
    %c1_81 = arith.constant 1 : index
    %c0_82 = arith.constant 0 : index
    %c32_83 = arith.constant 32 : index
    %101 = vector.load %arg5[%c1_81, %c0_82, %c32_83] : memref<2x10x320xf32, #tpu.memory_space<vmem>>, vector<1x8x256xf32>
    %102 = vector.shape_cast %101 : vector<1x8x256xf32> to vector<8x256xf32>
    %c0_84 = arith.constant 0 : index
    %c1_85 = arith.constant 1 : index
    %c0_86 = arith.constant 0 : index
    %103 = vector.load %arg2[%c0_84, %c1_85, %c0_86] : memref<3x3x256xf32, #tpu.memory_space<vmem>>, vector<1x1x256xf32>
    %104 = vector.shape_cast %103 : vector<1x1x256xf32> to vector<256xf32>
    %105 = vector.shape_cast %104 : vector<256xf32> to vector<1x256xf32>
    %106 = vector.broadcast %105 : vector<1x256xf32> to vector<8x256xf32>
    %107 = arith.mulf %102, %106 : vector<8x256xf32>
    %108 = arith.addf %100, %107 : vector<8x256xf32>
    %c1_87 = arith.constant 1 : index
    %c0_88 = arith.constant 0 : index
    %c64_89 = arith.constant 64 : index
    %109 = vector.load %arg5[%c1_87, %c0_88, %c64_89] : memref<2x10x320xf32, #tpu.memory_space<vmem>>, vector<1x8x256xf32>
    %110 = vector.shape_cast %109 : vector<1x8x256xf32> to vector<8x256xf32>
    %c0_90 = arith.constant 0 : index
    %c2_91 = arith.constant 2 : index
    %c0_92 = arith.constant 0 : index
    %111 = vector.load %arg2[%c0_90, %c2_91, %c0_92] : memref<3x3x256xf32, #tpu.memory_space<vmem>>, vector<1x1x256xf32>
    %112 = vector.shape_cast %111 : vector<1x1x256xf32> to vector<256xf32>
    %113 = vector.shape_cast %112 : vector<256xf32> to vector<1x256xf32>
    %114 = vector.broadcast %113 : vector<1x256xf32> to vector<8x256xf32>
    %115 = arith.mulf %110, %114 : vector<8x256xf32>
    %116 = arith.addf %108, %115 : vector<8x256xf32>
    %c1_93 = arith.constant 1 : index
    %c1_94 = arith.constant 1 : index
    %c0_95 = arith.constant 0 : index
    %117 = vector.load %arg5[%c1_93, %c1_94, %c0_95] : memref<2x10x320xf32, #tpu.memory_space<vmem>>, vector<1x8x256xf32>
    %118 = vector.shape_cast %117 : vector<1x8x256xf32> to vector<8x256xf32>
    %c1_96 = arith.constant 1 : index
    %c0_97 = arith.constant 0 : index
    %c0_98 = arith.constant 0 : index
    %119 = vector.load %arg2[%c1_96, %c0_97, %c0_98] : memref<3x3x256xf32, #tpu.memory_space<vmem>>, vector<1x1x256xf32>
    %120 = vector.shape_cast %119 : vector<1x1x256xf32> to vector<256xf32>
    %121 = vector.shape_cast %120 : vector<256xf32> to vector<1x256xf32>
    %122 = vector.broadcast %121 : vector<1x256xf32> to vector<8x256xf32>
    %123 = arith.mulf %118, %122 : vector<8x256xf32>
    %124 = arith.addf %116, %123 : vector<8x256xf32>
    %c1_99 = arith.constant 1 : index
    %c1_100 = arith.constant 1 : index
    %c32_101 = arith.constant 32 : index
    %125 = vector.load %arg5[%c1_99, %c1_100, %c32_101] : memref<2x10x320xf32, #tpu.memory_space<vmem>>, vector<1x8x256xf32>
    %126 = vector.shape_cast %125 : vector<1x8x256xf32> to vector<8x256xf32>
    %c1_102 = arith.constant 1 : index
    %c1_103 = arith.constant 1 : index
    %c0_104 = arith.constant 0 : index
    %127 = vector.load %arg2[%c1_102, %c1_103, %c0_104] : memref<3x3x256xf32, #tpu.memory_space<vmem>>, vector<1x1x256xf32>
    %128 = vector.shape_cast %127 : vector<1x1x256xf32> to vector<256xf32>
    %129 = vector.shape_cast %128 : vector<256xf32> to vector<1x256xf32>
    %130 = vector.broadcast %129 : vector<1x256xf32> to vector<8x256xf32>
    %131 = arith.mulf %126, %130 : vector<8x256xf32>
    %132 = arith.addf %124, %131 : vector<8x256xf32>
    %c1_105 = arith.constant 1 : index
    %c1_106 = arith.constant 1 : index
    %c64_107 = arith.constant 64 : index
    %133 = vector.load %arg5[%c1_105, %c1_106, %c64_107] : memref<2x10x320xf32, #tpu.memory_space<vmem>>, vector<1x8x256xf32>
    %134 = vector.shape_cast %133 : vector<1x8x256xf32> to vector<8x256xf32>
    %c1_108 = arith.constant 1 : index
    %c2_109 = arith.constant 2 : index
    %c0_110 = arith.constant 0 : index
    %135 = vector.load %arg2[%c1_108, %c2_109, %c0_110] : memref<3x3x256xf32, #tpu.memory_space<vmem>>, vector<1x1x256xf32>
    %136 = vector.shape_cast %135 : vector<1x1x256xf32> to vector<256xf32>
    %137 = vector.shape_cast %136 : vector<256xf32> to vector<1x256xf32>
    %138 = vector.broadcast %137 : vector<1x256xf32> to vector<8x256xf32>
    %139 = arith.mulf %134, %138 : vector<8x256xf32>
    %140 = arith.addf %132, %139 : vector<8x256xf32>
    %c1_111 = arith.constant 1 : index
    %c2_112 = arith.constant 2 : index
    %c0_113 = arith.constant 0 : index
    %141 = vector.load %arg5[%c1_111, %c2_112, %c0_113] : memref<2x10x320xf32, #tpu.memory_space<vmem>>, vector<1x8x256xf32>
    %142 = vector.shape_cast %141 : vector<1x8x256xf32> to vector<8x256xf32>
    %c2_114 = arith.constant 2 : index
    %c0_115 = arith.constant 0 : index
    %c0_116 = arith.constant 0 : index
    %143 = vector.load %arg2[%c2_114, %c0_115, %c0_116] : memref<3x3x256xf32, #tpu.memory_space<vmem>>, vector<1x1x256xf32>
    %144 = vector.shape_cast %143 : vector<1x1x256xf32> to vector<256xf32>
    %145 = vector.shape_cast %144 : vector<256xf32> to vector<1x256xf32>
    %146 = vector.broadcast %145 : vector<1x256xf32> to vector<8x256xf32>
    %147 = arith.mulf %142, %146 : vector<8x256xf32>
    %148 = arith.addf %140, %147 : vector<8x256xf32>
    %c1_117 = arith.constant 1 : index
    %c2_118 = arith.constant 2 : index
    %c32_119 = arith.constant 32 : index
    %149 = vector.load %arg5[%c1_117, %c2_118, %c32_119] : memref<2x10x320xf32, #tpu.memory_space<vmem>>, vector<1x8x256xf32>
    %150 = vector.shape_cast %149 : vector<1x8x256xf32> to vector<8x256xf32>
    %c2_120 = arith.constant 2 : index
    %c1_121 = arith.constant 1 : index
    %c0_122 = arith.constant 0 : index
    %151 = vector.load %arg2[%c2_120, %c1_121, %c0_122] : memref<3x3x256xf32, #tpu.memory_space<vmem>>, vector<1x1x256xf32>
    %152 = vector.shape_cast %151 : vector<1x1x256xf32> to vector<256xf32>
    %153 = vector.shape_cast %152 : vector<256xf32> to vector<1x256xf32>
    %154 = vector.broadcast %153 : vector<1x256xf32> to vector<8x256xf32>
    %155 = arith.mulf %150, %154 : vector<8x256xf32>
    %156 = arith.addf %148, %155 : vector<8x256xf32>
    %c1_123 = arith.constant 1 : index
    %c2_124 = arith.constant 2 : index
    %c64_125 = arith.constant 64 : index
    %157 = vector.load %arg5[%c1_123, %c2_124, %c64_125] : memref<2x10x320xf32, #tpu.memory_space<vmem>>, vector<1x8x256xf32>
    %158 = vector.shape_cast %157 : vector<1x8x256xf32> to vector<8x256xf32>
    %c2_126 = arith.constant 2 : index
    %c2_127 = arith.constant 2 : index
    %c0_128 = arith.constant 0 : index
    %159 = vector.load %arg2[%c2_126, %c2_127, %c0_128] : memref<3x3x256xf32, #tpu.memory_space<vmem>>, vector<1x1x256xf32>
    %160 = vector.shape_cast %159 : vector<1x1x256xf32> to vector<256xf32>
    %161 = vector.shape_cast %160 : vector<256xf32> to vector<1x256xf32>
    %162 = vector.broadcast %161 : vector<1x256xf32> to vector<8x256xf32>
    %163 = arith.mulf %158, %162 : vector<8x256xf32>
    %164 = arith.addf %156, %163 : vector<8x256xf32>
    %c1_129 = arith.constant 1 : index
    %c0_130 = arith.constant 0 : index
    %c0_131 = arith.constant 0 : index
    %165 = vector.load %arg4[%c1_129, %c0_130, %c0_131] : memref<2x8x256xf32, #tpu.memory_space<vmem>>, vector<1x8x256xf32>
    %166 = vector.shape_cast %165 : vector<1x8x256xf32> to vector<8x256xf32>
    %167 = vector.shape_cast %164 : vector<8x256xf32> to vector<1x8x256xf32>
    tpu.vector_store %arg4[%c1_129, %c0_130, %c0_131], %167 {strides = array<i32>} : memref<2x8x256xf32, #tpu.memory_space<vmem>>, vector<1x8x256xf32>,
    return
  }
  func.func @transform_0(%arg0: i32) -> (i32, i32, i32) {
    %c0_i32 = arith.constant 0 : i32
    %c0_i32_0 = arith.constant 0 : i32
    %c0_i32_1 = arith.constant 0 : i32
    return %arg0, %c0_i32, %c0_i32_0 : i32, i32, i32
  }
  func.func @transform_1(%arg0: i32) -> (i32, i32, i32) {
    %c0_i32 = arith.constant 0 : i32
    %c0_i32_0 = arith.constant 0 : i32
    %c0_i32_1 = arith.constant 0 : i32
    %c0_i32_2 = arith.constant 0 : i32
    return %c0_i32, %c0_i32_0, %c0_i32_1 : i32, i32, i32
  }
  func.func @transform_2(%arg0: i32) -> (i32, i32) {
    %c0_i32 = arith.constant 0 : i32
    %c0_i32_0 = arith.constant 0 : i32
    %c0_i32_1 = arith.constant 0 : i32
    return %c0_i32, %c0_i32_0 : i32, i32
  }
  func.func @transform_3(%arg0: i32) -> (i32, i32, i32) {
    %c0_i32 = arith.constant 0 : i32
    %c0_i32_0 = arith.constant 0 : i32
    %c0_i32_1 = arith.constant 0 : i32
    return %arg0, %c0_i32, %c0_i32_0 : i32, i32, i32
  }
}

</mosaic_0001>

<bundles_post_ra>
// kernel: tpu_custom_call.1
= control target key start
LH: loop header
LB: loop body
LE: loop exit
PB: predicated region body
PF: predicated region fallthrough
CT: control target
= control target key end

     0   :  { %8 = vsyncpa [#allocation4], 0  ;;  %s1487_s0 = inlined_call_operand.hbm [shape: f32[2,8,256], index: 0, kind: input, shape index: {}]   ;;  %s1488_s1 = inlined_call_operand.hbm [shape: f32[3,3,256], index: 1, kind: input, shape index: {}]   ;;  %s1489_s2 = inlined_call_operand.vmem [shape: f32[1,256], index: 2, kind: input, shape index: {}]   ;;  %s1490_s3 = inlined_call_operand.hbm [shape: f32[2,8,256], index: 3, kind: output, shape index: {}]  }
   0x1   :  { %9 = vsyncpa [#allocation7], 0 }
   0x2   :  { %10 = vsyncpa [#allocation5], 0  ;;  %s989_s12 = smov [#allocation3]  }
   0x3   :  { %s16_s13 = sshll.u32 %s989_s12, 4  ;;  %s17_s13 = int_to_ptr.vmem [resolvable:$true] %s16_s13 }
   0x4   :  { %s931_s14 = scalar_lea.vmem %s17_s13, 512  ;;  %p936_p1 = scmp.lt.s32.totalorder %s17_s13, %s17_s13 }
   0x5   :  { %p932_p0 = scmp.ne.s32.totalorder %s17_s13, %s931_s14  ;;  %p937_p2 = scmp.lt.s32.totalorder %s931_s14, %s931_s14 }
   0x7   :  { %p938_p3 = por %p937_p2, %p936_p1 }
   0x9   :  { %p939_p4 = pnand %p938_p3, %p932_p0 }
   0xb   :  { %942 = shalt.err (!%p939_p4)
}
   0xc   :  { %s990_s15 = smov 256   ;;  %s991_s16 = smov 16  }
   0xd   :  { %22 = dma.hbm_to_vmem [thread:$0]  %s1487_s0, 512, %s17_s13, [#allocation4], %s990_s15, %s990_s15, %s991_s16  }
   0xe   :  { %s992_s19 = smov [#allocation6]  }
   0xf   :  { %s28_s20 = sshll.u32 %s992_s19, 4  ;;  %s29_s20 = int_to_ptr.vmem [resolvable:$true] %s28_s20 }
  0x10   :  { %s951_s21 = scalar_lea.vmem %s29_s20, 384  ;;  %p956_p6 = scmp.lt.s32.totalorder %s29_s20, %s29_s20 }
  0x11   :  { %p952_p5 = scmp.ne.s32.totalorder %s29_s20, %s951_s21  ;;  %p957_p7 = scmp.lt.s32.totalorder %s951_s21, %s951_s21 }
  0x13   :  { %p958_p8 = por %p957_p7, %p956_p6 }
  0x15   :  { %p959_p9 = pnand %p958_p8, %p952_p5 }
  0x17   :  { %962 = shalt.err (!%p959_p9)
}
  0x18   :  { %s993_s22 = smov 128   ;;  %s994_s23 = smov 8  }
  0x19   :  { %34 = dma.hbm_to_vmem [thread:$0]  %s1488_s1, 384, %s29_s20, [#allocation7], %s993_s22, %s993_s22, %s994_s23  }
  0x1a   :  { %983 = dma.done.wait [#allocation4], 512  }
  0x1b   :  { %984 = vsyncadd [#allocation4], 4294966784 }
  0x1c   :  { %985 = dma.done.wait [#allocation7], 384  }
  0x1d   :  { %986 = vsyncadd [#allocation7], 4294966912  ;;  %v43_v0 = vlaneseq  ;;  %vm58_vm0 = vcmask 261120   ;;  %vm60_vm1 = vcmask 254976   ;;  %vm64_vm2 = vcmask 523520   ;;  %v72_v3 = vld [vmem:[#allocation3 + $0x10] sm:$0xff] }
  0x1e   :  { %vm66_vm4 = vcmask 517376   ;;  %v995_v1 = vmov 0.0   ;;  %v70_v4 = vld [vmem:[#allocation3] sm:$0xff]  ;;  %v73_v5 = vld [vmem:[#allocation3 + $0x18] sm:$0xff]  ;;  %v80_v6 = vrot.slane %v72_v3, 7  ;;  %v71_v8 = vld [vmem:[#allocation3 + $0x8] sm:$0xff] }
  0x1f   :  { %vm45_vm3 = vcmp.lt.s32.totalorder %v43_v0, 320  ;;  %v117_v2 = vshrl.u32 %v43_v0, 7  ;;  %v78_v7 = vrot.slane %v70_v4, 7  ;;  %s996_s0 = smov 32   ;;  %v81_v9 = vrot.slane %v73_v5, 7  ;;  %s997_s1 = smov 64  }
  0x20   :  { %50 = vst.msk [vmem:[#allocation2 + $0x30] ss:$8 sm:$0x7] %vm45_vm3, %v995_v1  ;;  %56 = vst.msk [vmem:[#allocation2 + $0x49] ss:$8 sm:$0x7] %vm45_vm3, %v995_v1  ;;  %86 = vrot.lane.b32.xlu1 %v80_v6, %s996_s0 }
  0x21   :  { %47 = vst.msk [vmem:[#allocation2] ss:$8 sm:$0x7] %vm45_vm3, %v995_v1  ;;  %53 = vst.msk [vmem:[#allocation2 + $0x19] ss:$8 sm:$0x7] %vm45_vm3, %v995_v1  ;;  %82 = vrot.lane.b32.xlu0 %v78_v7, %s996_s0 }
  0x22   :  { %62 = vst.msk [vmem:[#allocation2 + $0x30] sm:$0xff] %vm58_vm0, %v995_v1  ;;  %59 = vst.msk [vmem:[#allocation2] sm:$0xff] %vm58_vm0, %v995_v1  ;;  %v79_v10 = vrot.slane %v71_v8, 7  ;;  %v1033_v11 = vsub.s32 1, %v117_v2  ;;  %v1035_v12 = vsub.s32 0, %v117_v2  ;;  %vm98_vm5 = vcmask 1047809  }
  0x23   :  { %63 = vst.msk [vmem:[#allocation2 + $0x48] sm:$0x3] %vm60_vm1, %v995_v1  ;;  %61 = vst.msk [vmem:[#allocation2 + $0x18] sm:$0x3] %vm60_vm1, %v995_v1  ;;  %vm103_vm6 = vcmask 1040640   ;;  %vm101_vm7 = vcmask 261121  }
  0x24   :  { %68 = vst.msk [vmem:[#allocation2 + $0x40] sm:$0xff] %vm64_vm2, %v995_v1  ;;  %65 = vst.msk [vmem:[#allocation2 + $0x10] sm:$0xff] %vm64_vm2, %v995_v1  ;;  %v146_v13 = vld [vmem:[#allocation6 + $0x1] ss:$4 sm:$0x3]  ;;  %88 = vrot.lane.b32.xlu1 %v81_v9, %s996_s0  ;;  %vm106_vm8 = vcmask 253952  }
  0x25   :  { %69 = vst.msk [vmem:[#allocation2 + $0x58] sm:$0x3] %vm66_vm4, %v995_v1  ;;  %67 = vst.msk [vmem:[#allocation2 + $0x28] sm:$0x3] %vm66_vm4, %v995_v1  ;;  %84 = vrot.lane.b32.xlu0 %v79_v10, %s996_s0  ;;  %v155_v14 = vrot.slane %v146_v13, %v1033_v11  ;;  %v151_v15 = vrot.slane %v146_v13, %v1035_v12  ;;  %v1094_v55 = vld [vmem:[%s1489_s2] sm:$0x3] }
  0x26   :  { %v539_v16 = vld [vmem:[#allocation6 + $0x1] ss:$4 sm:$0x3]  ;;  %v184_v19 = vld [vmem:[#allocation6 + $0x2] ss:$4 sm:$0x3]  ;;  %v512_v6 = vrot.slane %v1094_v55, %v1035_v12 }
  0x27   :  { %v548_v17 = vrot.slane %v539_v16, %v1033_v11  ;;  %v544_v18 = vrot.slane %v539_v16, %v1035_v12  ;;  %v193_v20 = vrot.slane %v184_v19, %v1033_v11  ;;  %v189_v21 = vrot.slane %v184_v19, %v1035_v12  ;;  %v575_v22 = vld [vmem:[#allocation6 + $0x2] ss:$4 sm:$0x3]  ;;  %v260_v25 = vld [vmem:[#allocation6 + $0x9] ss:$4 sm:$0x3] }
  0x28   :  { %158 = vrot.lane.b32.xlu1 %v155_v14, %s996_s0  ;;  %v584_v23 = vrot.slane %v575_v22, %v1033_v11  ;;  %v580_v24 = vrot.slane %v575_v22, %v1035_v12  ;;  %v269_v26 = vrot.slane %v260_v25, %v1033_v11  ;;  %v265_v27 = vrot.slane %v260_v25, %v1035_v12  ;;  %v647_v28 = vld [vmem:[#allocation6 + $0x9] ss:$4 sm:$0x3]  ;;  %v312_v31 = vld [vmem:[#allocation6 + $0xa] ss:$4 sm:$0x3] }
  0x29   :  { %156 = vrot.lane.b32.xlu0 %v151_v15, %s996_s0  ;;  %v656_v29 = vrot.slane %v647_v28, %v1033_v11  ;;  %v652_v30 = vrot.slane %v647_v28, %v1035_v12  ;;  %v321_v32 = vrot.slane %v312_v31, %v1033_v11  ;;  %v317_v33 = vrot.slane %v312_v31, %v1035_v12  ;;  %v698_v34 = vld [vmem:[#allocation6 + $0xa] ss:$4 sm:$0x3]  ;;  %v402_v37 = vld [vmem:[#allocation6 + $0x11] ss:$4 sm:$0x3] }
  0x2a   :  { %v707_v35 = vrot.slane %v698_v34, %v1033_v11  ;;  %v703_v36 = vrot.slane %v698_v34, %v1035_v12  ;;  %v411_v38 = vrot.slane %v402_v37, %v1033_v11  ;;  %v407_v39 = vrot.slane %v402_v37, %v1035_v12  ;;  %v785_v40 = vld [vmem:[#allocation6 + $0x11] ss:$4 sm:$0x3]  ;;  %v454_v43 = vld [vmem:[#allocation6 + $0x12] ss:$4 sm:$0x3] }
  0x2b   :  { %v794_v41 = vrot.slane %v785_v40, %v1033_v11  ;;  %v790_v42 = vrot.slane %v785_v40, %v1035_v12  ;;  %v463_v44 = vrot.slane %v454_v43, %v1033_v11  ;;  %v459_v45 = vrot.slane %v454_v43, %v1035_v12  ;;  %v836_v46 = vld [vmem:[#allocation6 + $0x12] ss:$4 sm:$0x3]  ;;  %v1087_v51 = vld [vmem:[#allocation6] ss:$4 sm:$0x3] }
  0x2c   :  { %551 = vrot.lane.b32.xlu1 %v548_v17, %s996_s0  ;;  %v845_v47 = vrot.slane %v836_v46, %v1033_v11  ;;  %v841_v48 = vrot.slane %v836_v46, %v1035_v12  ;;  %v1089_v52 = vld [vmem:[#allocation6] ss:$4 sm:$0x3]  ;;  %v226_v53 = vld [vmem:[#allocation6 + $0x8] ss:$4 sm:$0x3]  ;;  %v133_v62 = vrot.slane %v1087_v51, %v1035_v12 }
  0x2d   :  { %549 = vrot.lane.b32.xlu0 %v544_v18, %s996_s0  ;;  %v615_v54 = vld [vmem:[#allocation6 + $0x8] ss:$4 sm:$0x3]  ;;  %v1096_v58 = vld [vmem:[#allocation6 + $0x10] ss:$4 sm:$0x3]  ;;  %v527_v63 = vrot.slane %v1089_v52, %v1035_v12  ;;  %v231_v1 = vrot.slane %v226_v53, %v1035_v12  ;;  %v235_v3 = vrot.slane %v226_v53, %v1033_v11  ;;  %v531_v15 = vrot.slane %v1089_v52, %v1033_v11 }
  0x2e   :  { %v1098_v59 = vld [vmem:[#allocation6 + $0x10] ss:$4 sm:$0x3]  ;;  %v1109_v0 = vld [vmem:[%s1489_s2] sm:$0x3]  ;;  %v620_v2 = vrot.slane %v615_v54, %v1035_v12  ;;  %v373_v4 = vrot.slane %v1096_v58, %v1035_v12  ;;  %v624_v14 = vrot.slane %v615_v54, %v1033_v11  ;;  %vm246_vm9 = vcmask 1046528  }
  0x2f   :  { %v758_v5 = vrot.slane %v1098_v59, %v1035_v12  ;;  %v119_v16 = vrot.slane %v1109_v0, %v1035_v12  ;;  %s998_s2 = smov 96   ;;  %vm388_vm10 = vcmask 1045504   ;;  %vm198_vm11 = vcmask 523264   ;;  %s999_s30 = smov [#allocation8]  }
  0x30   :  { %196 = vrot.lane.b32.xlu1 %v193_v20, %s997_s1  ;;  %vm176_vm12 = vcmask 785408   ;;  %s895_s4 = sshll.u32 %s999_s30, 4  ;;  %s896_s4 = int_to_ptr.vmem [resolvable:$true] %s895_s4 }
  0x31   :  { %194 = vrot.lane.b32.xlu0 %v189_v21, %s997_s1  ;;  %s963_s5 = scalar_lea.vmem %s896_s4, 512  ;;  %p968_p11 = scmp.lt.s32.totalorder %s896_s4, %s896_s4 }
  0x32   :  { %p964_p10 = scmp.ne.s32.totalorder %s896_s4, %s963_s5  ;;  %p969_p12 = scmp.lt.s32.totalorder %s963_s5, %s963_s5 }
  0x34   :  { %587 = vrot.lane.b32.xlu1 %v584_v23, %s997_s1  ;;  %v137_v23 = vrot.slane %v1087_v51, %v1033_v11  ;;  %p970_p13 = por %p969_p12, %p968_p11 }
  0x35   :  { %585 = vrot.lane.b32.xlu0 %v580_v24, %s997_s1 }
  0x36   :  { %p971_p0 = pnand %p970_p13, %p964_p10 }
  0x38   :  { %272 = vrot.lane.b32.xlu1 %v269_v26, %s996_s0 }
  0x39   :  { %270 = vrot.lane.b32.xlu0 %v265_v27, %s996_s0 }
  0x3c   :  { %659 = vrot.lane.b32.xlu1 %v656_v29, %s996_s0 }
  0x3d   :  { %657 = vrot.lane.b32.xlu0 %v652_v30, %s996_s0 }
  0x40   :  { %324 = vrot.lane.b32.xlu1 %v321_v32, %s997_s1 }
  0x41   :  { %322 = vrot.lane.b32.xlu0 %v317_v33, %s997_s1 }
  0x44   :  { %710 = vrot.lane.b32.xlu1 %v707_v35, %s997_s1 }
  0x45   :  { %708 = vrot.lane.b32.xlu0 %v703_v36, %s997_s1 }
  0x48   :  { %414 = vrot.lane.b32.xlu1 %v411_v38, %s996_s0 }
  0x49   :  { %412 = vrot.lane.b32.xlu0 %v407_v39, %s996_s0 }
  0x4c   :  { %797 = vrot.lane.b32.xlu1 %v794_v41, %s996_s0 }
  0x4d   :  { %795 = vrot.lane.b32.xlu0 %v790_v42, %s996_s0 }
  0x50   :  { %466 = vrot.lane.b32.xlu1 %v463_v44, %s997_s1 }
  0x51   :  { %464 = vrot.lane.b32.xlu0 %v459_v45, %s997_s1 }
  0x54   :  { %848 = vrot.lane.b32.xlu1 %v845_v47, %s997_s1 }
  0x55   :  { %846 = vrot.lane.b32.xlu0 %v841_v48, %s997_s1 }
  0x92   :  { %v87_v49 = vpop.permute.xlu1 %86 }
  0x93   :  { %v83_v50 = vpop.permute.xlu0 %82  ;;  %108 = vst.msk [vmem:[#allocation2 + $0x30] sm:$0xfe] %vm98_vm5, %v87_v49 }
  0x94   :  { %111 = vst.msk [vmem:[#allocation2 + $0x48] sm:$0x1] %vm103_vm6, %v87_v49  ;;  %104 = vst.msk [vmem:[#allocation2 + $0x18] sm:$0x1] %vm103_vm6, %v83_v50 }
  0x95   :  { %99 = vst.msk [vmem:[#allocation2] sm:$0xfe] %vm98_vm5, %v83_v50 }
  0x96   :  { %v89_v56 = vpop.permute.xlu1 %88 }
  0x97   :  { %v85_v57 = vpop.permute.xlu0 %84  ;;  %v91_v60 = vsel %vm58_vm0, %v87_v49, %v89_v56  ;;  %110 = vst.msk [vmem:[#allocation2 + $0x40] sm:$0xfe] %vm101_vm7, %v89_v56 }
  0x98   :  { %113 = vst.msk [vmem:[#allocation2 + $0x58] sm:$0x1] %vm106_vm8, %v89_v56  ;;  %v90_v61 = vsel %vm58_vm0, %v83_v50, %v85_v57  ;;  %107 = vst.msk [vmem:[#allocation2 + $0x28] sm:$0x1] %vm106_vm8, %v85_v57  ;;  %v377_v50 = vrot.slane %v1096_v58, %v1033_v11 }
  0x99   :  { %102 = vst.msk [vmem:[#allocation2 + $0x10] sm:$0xfe] %vm101_vm7, %v85_v57  ;;  %109 = vst [vmem:[#allocation2 + $0x38] sm:$0xfe] %v91_v60 }
  0x9a   :  { %112 = vst [vmem:[#allocation2 + $0x50] sm:$0x1] %v91_v60  ;;  %100 = vst [vmem:[#allocation2 + $0x8] sm:$0xfe] %v90_v61  ;;  %v1120_v7 = vpop.permute.xlu1 %158  ;;  %v1124_v10 = vld [vmem:[#allocation2 + $0x30] sm:$0xff] }
  0x9b   :  { %105 = vst [vmem:[#allocation2 + $0x20] sm:$0x1] %v90_v61  ;;  %v1122_v8 = vpop.permute.xlu0 %156  ;;  %v534_v19 = vmul.f32 %v527_v63, %v1124_v10  ;;  %v1135_v20 = vld [vmem:[#allocation2 + $0x18] sm:$0x1]  ;;  %v1137_v21 = vld [vmem:[#allocation2 + $0x30] sm:$0xfe] }
  0x9c   :  { %v126_v9 = vld [vmem:[#allocation2] sm:$0xff]  ;;  %v1139_v22 = vld [vmem:[#allocation2 + $0x48] sm:$0x1]  ;;  %v240_v25 = vmul.f32 %v231_v1, %v1135_v20  ;;  %v1146_v12 = vmul.f32 %v620_v2, %v1137_v21  ;;  %v1153_v28 = vld [vmem:[#allocation2 + $0x18] sm:$0x3] }
  0x9d   :  { %v1126_v13 = vld [vmem:[#allocation2] sm:$0xfe]  ;;  %v140_v17 = vmul.f32 %v133_v62, %v126_v9  ;;  %v164_v18 = vmul.f32 %v1122_v8, %v126_v9  ;;  %v1149_v26 = vmul.f32 %v620_v2, %v1139_v22  ;;  %v1155_v29 = vld [vmem:[#allocation2 + $0x30] sm:$0xfc]  ;;  %v1162_v31 = vmul.f32 %v373_v4, %v1153_v28  ;;  %v1164_v32 = vld [vmem:[#allocation2 + $0x48] sm:$0x3] }
  0x9e   :  { %v238_v24 = vmul.f32 %v231_v1, %v1126_v13  ;;  %v1151_v27 = vld [vmem:[#allocation2] sm:$0xfc]  ;;  %v1167_v33 = vmul.f32 %v758_v5, %v1155_v29  ;;  %v1169_v34 = vadd.f32 %v534_v19, %v512_v6  ;;  %v552_v36 = vpop.permute.xlu1 %551  ;;  %v248_v40 = vrot.slane %v240_v25, 1 }
  0x9f   :  { %170 = vrot.lane.b32.xlu0 %v164_v18, %s998_s2  ;;  %v1159_v30 = vmul.f32 %v373_v4, %v1151_v27  ;;  %v1171_v37 = vld [vmem:[#allocation2 + $0x40] sm:$0xff]  ;;  %v550_v38 = vpop.permute.xlu0 %549  ;;  %v1174_v41 = vmul.f32 %v758_v5, %v1164_v32  ;;  %v1176_v42 = vadd.f32 %v140_v17, %v119_v16  ;;  %v762_v1 = vrot.slane %v1098_v59, %v1033_v11 }
  0xa0   :  { %v144_v35 = vld [vmem:[#allocation2 + $0x10] sm:$0xff]  ;;  %v247_v39 = vrot.slane %v238_v24, 1  ;;  %v1181_v45 = vld [vmem:[#allocation2 + $0x38] sm:$0xff]  ;;  %v557_v46 = vmul.f32 %v550_v38, %v1124_v10  ;;  %v559_v47 = vmul.f32 %v552_v36, %v1171_v37  ;;  %v516_v5 = vrot.slane %v1094_v55, %v1033_v11 }
  0xa1   :  { %v166_v43 = vmul.f32 %v1120_v7, %v144_v35  ;;  %v1179_v44 = vld [vmem:[#allocation2 + $0x8] sm:$0xff]  ;;  %v535_v51 = vmul.f32 %v531_v15, %v1181_v45  ;;  %v1197_v56 = vld [vmem:[#allocation2 + $0x38] sm:$0xfe]  ;;  %v1199_v57 = vld [vmem:[#allocation2 + $0x50] sm:$0x1]  ;;  %v553_v6 = vsel %vm58_vm0, %v550_v38, %v552_v36  ;;  %v635_v15 = vrot.slane %v1146_v12, 1 }
  0xa2   :  { %v1185_v48 = vld [vmem:[#allocation2 + $0x8] sm:$0xfe]  ;;  %v1187_v49 = vld [vmem:[#allocation2 + $0x20] sm:$0x1]  ;;  %v141_v52 = vmul.f32 %v137_v23, %v1179_v44  ;;  %563 = vrot.lane.b32.xlu1 %v557_v46, %s998_s2  ;;  %v1202_v60 = vsel %vm246_vm9, %v247_v39, %v248_v40  ;;  %v1204_v58 = vpop.permute.xlu1 %196  ;;  %v628_v62 = vmul.f32 %v624_v14, %v1197_v56  ;;  %v630_v63 = vmul.f32 %v624_v14, %v1199_v57  ;;  %v1228_v55 = vld [vmem:[#allocation2 + $0x38] sm:$0xfc] }
  0xa3   :  { %174 = vrot.lane.b32.xlu0 %v166_v43, %s998_s2  ;;  %v239_v53 = vmul.f32 %v235_v3, %v1185_v48  ;;  %v241_v54 = vmul.f32 %v235_v3, %v1187_v49  ;;  %v1206_v61 = vpop.permute.xlu0 %194  ;;  %v1213_v3 = vld [vmem:[#allocation2 + $0x8] sm:$0xfc]  ;;  %v1215_v4 = vld [vmem:[#allocation2 + $0x20] sm:$0x3]  ;;  %v636_v16 = vrot.slane %v1149_v26, 1  ;;  %v123_v14 = vrot.slane %v1109_v0, %v1033_v11 }
  0xa4   :  { %v203_v2 = vmul.f32 %v1206_v61, %v126_v9  ;;  %v381_v17 = vmul.f32 %v377_v50, %v1213_v3  ;;  %v383_v18 = vmul.f32 %v377_v50, %v1215_v4  ;;  %v205_v19 = vmul.f32 %v1204_v58, %v144_v35  ;;  %v1232_v0 = vld [vmem:[#allocation2 + $0x50] sm:$0x3] }
  0xa5   :  { %v250_v59 = vrot.slane %v239_v53, 1  ;;  %v251_v9 = vrot.slane %v241_v54, 1  ;;  %v638_v25 = vrot.slane %v628_v62, 1  ;;  %v639_v12 = vrot.slane %v630_v63, 1 }
  0xa6   :  { %567 = vrot.lane.b32.xlu1 %v559_v47, %s998_s2  ;;  %v588_v23 = vpop.permute.xlu1 %587  ;;  %v766_v11 = vmul.f32 %v762_v1, %v1228_v55  ;;  %v392_v36 = vrot.slane %v381_v17, 2  ;;  %v389_v38 = vrot.slane %v1159_v30, 2  ;;  %v390_v39 = vrot.slane %v1162_v31, 2 }
  0xa7   :  { %209 = vrot.lane.b32.xlu0 %v203_v2, %s997_s1  ;;  %v586_v24 = vpop.permute.xlu0 %585  ;;  %v393_v40 = vrot.slane %v383_v18, 2  ;;  %v768_v43 = vmul.f32 %v762_v1, %v1232_v0  ;;  %v773_v35 = vrot.slane %v1167_v33, 2  ;;  %v774_v46 = vrot.slane %v1174_v41, 2 }
  0xa8   :  { %v593_v26 = vmul.f32 %v586_v24, %v1124_v10  ;;  %v776_v47 = vrot.slane %v766_v11, 2  ;;  %v1242_v50 = vadd.f32 %v535_v51, %v516_v5  ;;  %v1244_v10 = vadd.f32 %v141_v52, %v123_v14  ;;  %v258_v14 = vld [vmem:[#allocation2 + $0x28] sm:$0x1]  ;;  %v645_v11 = vld [vmem:[#allocation2 + $0x40] sm:$0xfe] }
  0xa9   :  { %v1247_v30 = vsel %vm246_vm9, %v250_v59, %v251_v9  ;;  %v777_v54 = vrot.slane %v768_v43, 2  ;;  %v1254_v33 = vsel %vm246_vm9, %v635_v15, %v636_v16  ;;  %v1257_v41 = vsel %vm246_vm9, %v638_v25, %v639_v12  ;;  %v257_v16 = vld [vmem:[#allocation2 + $0x10] sm:$0xfe] }
  0xaa   :  { %599 = vrot.lane.b32.xlu1 %v593_v26, %s997_s1  ;;  %v1249_v31 = vpop.permute.xlu1 %272  ;;  %v1260_v62 = vsel %vm388_vm10, %v392_v36, %v393_v40  ;;  %v558_v51 = vmul.f32 %v553_v6, %v1181_v45  ;;  %v595_v52 = vmul.f32 %v588_v23, %v1171_v37  ;;  %v589_v63 = vsel %vm198_vm11, %v586_v24, %v588_v23  ;;  %v646_v26 = vld [vmem:[#allocation2 + $0x58] sm:$0x1] }
  0xab   :  { %213 = vrot.lane.b32.xlu0 %v205_v19, %s997_s1  ;;  %v1251_v53 = vpop.permute.xlu0 %270  ;;  %v1270_v5 = vsel %vm388_vm10, %v389_v38, %v390_v39  ;;  %v160_v15 = vsel %vm58_vm0, %v1122_v8, %v1120_v7  ;;  %v1278_v37 = vsel %vm388_vm10, %v773_v35, %v774_v46  ;;  %v1286_v17 = vsel %vm388_vm10, %v776_v47, %v777_v54 }
  0xac   :  { %v278_v1 = vmul.f32 %v1251_v53, %v1126_v13  ;;  %v281_v2 = vmul.f32 %v1251_v53, %v1135_v20  ;;  %v165_v6 = vmul.f32 %v160_v15, %v1179_v44  ;;  %v199_v7 = vsel %vm198_vm11, %v1206_v61, %v1204_v58 }
  0xad   :  { %v594_v8 = vmul.f32 %v589_v63, %v1181_v45  ;;  %v280_v18 = vmul.f32 %v1249_v31, %v257_v16  ;;  %v283_v19 = vmul.f32 %v1249_v31, %v258_v14  ;;  %v204_v38 = vmul.f32 %v199_v7, %v1179_v44 }
  0xae   :  { %603 = vrot.lane.b32.xlu1 %v595_v52, %s997_s1  ;;  %v1281_v59 = vpop.permute.xlu1 %659  ;;  %v290_v23 = vrot.slane %v278_v1, 1  ;;  %v291_v24 = vrot.slane %v281_v2, 1 }
  0xaf   :  { %565 = vrot.lane.b32.xlu0 %v558_v51, %s998_s2  ;;  %v1283_v9 = vpop.permute.xlu0 %657  ;;  %v667_v45 = vmul.f32 %v1281_v59, %v645_v11  ;;  %v670_v58 = vmul.f32 %v1281_v59, %v646_v26  ;;  %v296_v39 = vrot.slane %v280_v18, 1  ;;  %v297_v40 = vrot.slane %v283_v19, 1 }
  0xb0   :  { %v665_v25 = vmul.f32 %v1283_v9, %v1137_v21  ;;  %v668_v12 = vmul.f32 %v1283_v9, %v1139_v22  ;;  %v292_v54 = vsel %vm246_vm9, %v290_v23, %v291_v24 }
  0xb1   :  { %v683_v51 = vrot.slane %v667_v45, 1  ;;  %v684_v52 = vrot.slane %v670_v58, 1 }
  0xb2   :  { %172 = vrot.lane.b32.xlu1 %v165_v6, %s998_s2  ;;  %v1302_v61 = vpop.permute.xlu1 %324  ;;  %v677_v35 = vrot.slane %v665_v25, 1  ;;  %v678_v46 = vrot.slane %v668_v12, 1 }
  0xb3   :  { %601 = vrot.lane.b32.xlu0 %v594_v8, %s997_s1  ;;  %v1304_v36 = vpop.permute.xlu0 %322  ;;  %v332_v1 = vmul.f32 %v1302_v61, %v257_v16  ;;  %v298_v8 = vsel %vm246_vm9, %v296_v39, %v297_v40  ;;  %v400_v39 = vld [vmem:[#allocation2 + $0x28] sm:$0x3] }
  0xb4   :  { %v330_v43 = vmul.f32 %v1304_v36, %v1126_v13  ;;  %v333_v47 = vmul.f32 %v1304_v36, %v1135_v20  ;;  %v335_v13 = vmul.f32 %v1302_v61, %v258_v14  ;;  %v679_v7 = vsel %vm246_vm9, %v677_v35, %v678_v46 }
  0xb6   :  { %211 = vrot.lane.b32.xlu1 %v204_v38, %s997_s1  ;;  %v1314_v63 = vpop.permute.xlu1 %710  ;;  %v342_v2 = vrot.slane %v330_v43, 1  ;;  %v343_v15 = vrot.slane %v333_v47, 1  ;;  %v349_v23 = vrot.slane %v335_v13, 1  ;;  %v399_v38 = vld [vmem:[#allocation2 + $0x10] sm:$0xfc] }
  0xb7   :  { %299 = vrot.lane.b32.xlu0 %v292_v54, %s998_s2  ;;  %v1316_v44 = vpop.permute.xlu0 %708  ;;  %v718_v16 = vmul.f32 %v1314_v63, %v645_v11  ;;  %v721_v14 = vmul.f32 %v1314_v63, %v646_v26 }
  0xb8   :  { %v716_v20 = vmul.f32 %v1316_v44, %v1137_v21  ;;  %v719_v6 = vmul.f32 %v1316_v44, %v1139_v22  ;;  %v348_v21 = vrot.slane %v332_v1, 1  ;;  %v685_v22 = vsel %vm246_vm9, %v683_v51, %v684_v52 }
  0xb9   :  { %v344_v24 = vsel %vm246_vm9, %v342_v2, %v343_v15  ;;  %v734_v26 = vrot.slane %v718_v16, 1  ;;  %v735_v58 = vrot.slane %v721_v14, 1  ;;  %v1354_v2 = vld [vmem:[#allocation2 + $0x40] sm:$0xfc]  ;;  %v1356_v15 = vld [vmem:[#allocation2 + $0x58] sm:$0x3] }
  0xba   :  { %686 = vrot.lane.b32.xlu1 %v679_v7, %s998_s2  ;;  %v1330_v18 = vpop.permute.xlu1 %414  ;;  %v728_v25 = vrot.slane %v716_v20, 1  ;;  %v729_v12 = vrot.slane %v719_v6, 1  ;;  %v350_v54 = vsel %vm246_vm9, %v348_v21, %v349_v23 }
  0xbb   :  { %303 = vrot.lane.b32.xlu0 %v298_v8, %s998_s2  ;;  %v1332_v19 = vpop.permute.xlu0 %412  ;;  %v422_v35 = vmul.f32 %v1330_v18, %v399_v38  ;;  %v425_v46 = vmul.f32 %v1330_v18, %v400_v39 }
  0xbc   :  { %v420_v45 = vmul.f32 %v1332_v19, %v1151_v27  ;;  %v423_v11 = vmul.f32 %v1332_v19, %v1153_v28  ;;  %v730_v13 = vsel %vm246_vm9, %v728_v25, %v729_v12  ;;  %v736_v25 = vsel %vm246_vm9, %v734_v26, %v735_v58 }
  0xbd   :  { %v438_v8 = vrot.slane %v422_v35, 2  ;;  %v439_v16 = vrot.slane %v425_v46, 2 }
  0xbe   :  { %690 = vrot.lane.b32.xlu1 %v685_v22, %s998_s2  ;;  %v1342_v40 = vpop.permute.xlu1 %797  ;;  %v432_v51 = vrot.slane %v420_v45, 2  ;;  %v433_v52 = vrot.slane %v423_v11, 2  ;;  %v274_v45 = vsel %vm58_vm0, %v1251_v53, %v1249_v31  ;;  %v661_v11 = vsel %vm58_vm0, %v1283_v9, %v1281_v59 }
  0xbf   :  { %351 = vrot.lane.b32.xlu0 %v344_v24, %s997_s1  ;;  %v1344_v43 = vpop.permute.xlu0 %795  ;;  %v805_v20 = vmul.f32 %v1342_v40, %v1354_v2  ;;  %v808_v6 = vmul.f32 %v1342_v40, %v1356_v15  ;;  %v440_v58 = vsel %vm388_vm10, %v438_v8, %v439_v16  ;;  %v279_v31 = vmul.f32 %v274_v45, %v1185_v48 }
  0xc0   :  { %v803_v47 = vmul.f32 %v1344_v43, %v1155_v29  ;;  %v806_v1 = vmul.f32 %v1344_v43, %v1164_v32  ;;  %v434_v12 = vsel %vm388_vm10, %v432_v51, %v433_v52  ;;  %v282_v53 = vmul.f32 %v274_v45, %v1187_v49 }
  0xc1   :  { %v822_v35 = vrot.slane %v808_v6, 2  ;;  %v666_v59 = vmul.f32 %v661_v11, %v1197_v56  ;;  %v669_v9 = vmul.f32 %v661_v11, %v1199_v57  ;;  %v293_v16 = vrot.slane %v279_v31, 1 }
  0xc2   :  { %737 = vrot.lane.b32.xlu1 %v730_v13, %s997_s1  ;;  %v815_v14 = vrot.slane %v803_v47, 2  ;;  %v816_v21 = vrot.slane %v806_v1, 2  ;;  %v467_v23 = vpop.permute.xlu1 %466 }
  0xc3   :  { %355 = vrot.lane.b32.xlu0 %v350_v54, %s997_s1  ;;  %v1364_v7 = vpop.permute.xlu0 %464  ;;  %v477_v47 = vmul.f32 %v467_v23, %v400_v39 }
  0xc4   :  { %v472_v22 = vmul.f32 %v1364_v7, %v1151_v27  ;;  %v475_v24 = vmul.f32 %v1364_v7, %v1153_v28  ;;  %v821_v27 = vrot.slane %v805_v20, 2  ;;  %v474_v28 = vmul.f32 %v467_v23, %v399_v38 }
  0xc5   :  { %v817_v26 = vsel %vm388_vm10, %v815_v14, %v816_v21  ;;  %v326_v38 = vsel %vm198_vm11, %v1304_v36, %v1302_v61  ;;  %v491_v39 = vrot.slane %v477_v47, 2  ;;  %v294_v14 = vrot.slane %v282_v53, 1 }
  0xc6   :  { %741 = vrot.lane.b32.xlu1 %v736_v25, %s997_s1  ;;  %v484_v54 = vrot.slane %v472_v22, 2  ;;  %v485_v51 = vrot.slane %v475_v24, 2  ;;  %v823_v6 = vsel %vm388_vm10, %v821_v27, %v822_v35  ;;  %v680_v21 = vrot.slane %v666_v59, 1 }
  0xc7   :  { %441 = vrot.lane.b32.xlu0 %v434_v12, %s998_s2  ;;  %v847_v46 = vpop.permute.xlu0 %846  ;;  %v681_v61 = vrot.slane %v669_v9, 1  ;;  %v331_v36 = vmul.f32 %v326_v38, %v1185_v48  ;;  %v416_v22 = vsel %vm58_vm0, %v1332_v19, %v1330_v18  ;;  %v799_v25 = vsel %vm58_vm0, %v1344_v43, %v1342_v40 }
  0xc8   :  { %v854_v52 = vmul.f32 %v847_v46, %v1155_v29  ;;  %v857_v1 = vmul.f32 %v847_v46, %v1164_v32  ;;  %v712_v29 = vsel %vm198_vm11, %v1316_v44, %v1314_v63  ;;  %v490_v32 = vrot.slane %v474_v28, 2 }
  0xc9   :  { %v486_v8 = vsel %vm388_vm10, %v484_v54, %v485_v51  ;;  %v334_v63 = vmul.f32 %v326_v38, %v1187_v49  ;;  %v717_v44 = vmul.f32 %v712_v29, %v1197_v56  ;;  %v720_v24 = vmul.f32 %v712_v29, %v1199_v57  ;;  %v849_v56 = vpop.permute.xlu1 %848 }
  0xca   :  { %824 = vrot.lane.b32.xlu1 %v817_v26, %s998_s2  ;;  %v866_v13 = vrot.slane %v854_v52, 2  ;;  %v867_v20 = vrot.slane %v857_v1, 2  ;;  %v492_v45 = vsel %vm388_vm10, %v490_v32, %v491_v39  ;;  %v421_v48 = vmul.f32 %v416_v22, %v1213_v3 }
  0xcb   :  { %445 = vrot.lane.b32.xlu0 %v440_v58, %s998_s2  ;;  %v424_v49 = vmul.f32 %v416_v22, %v1215_v4  ;;  %v295_v18 = vsel %vm246_vm9, %v293_v16, %v294_v14  ;;  %v345_v57 = vrot.slane %v331_v36, 1  ;;  %v346_v19 = vrot.slane %v334_v63, 1 }
  0xcc   :  { %v868_v12 = vsel %vm388_vm10, %v866_v13, %v867_v20  ;;  %v804_v11 = vmul.f32 %v799_v25, %v1228_v55  ;;  %v807_v40 = vmul.f32 %v799_v25, %v1232_v0  ;;  %v731_v43 = vrot.slane %v717_v44, 1 }
  0xcd   :  { %v732_v27 = vrot.slane %v720_v24, 1  ;;  %v468_v35 = vsel %vm198_vm11, %v1364_v7, %v467_v23  ;;  %v682_v28 = vsel %vm246_vm9, %v680_v21, %v681_v61  ;;  %v850_v47 = vsel %vm198_vm11, %v847_v46, %v849_v56 }
  0xce   :  { %828 = vrot.lane.b32.xlu1 %v823_v6, %s998_s2  ;;  %v435_v26 = vrot.slane %v421_v48, 2  ;;  %v436_v58 = vrot.slane %v424_v49, 2  ;;  %v818_v54 = vrot.slane %v804_v11, 2  ;;  %v819_v51 = vrot.slane %v807_v40, 2 }
  0xcf   :  { %493 = vrot.lane.b32.xlu0 %v486_v8, %s997_s1  ;;  %v473_v52 = vmul.f32 %v468_v35, %v1213_v3  ;;  %v476_v1 = vmul.f32 %v468_v35, %v1215_v4  ;;  %v855_v31 = vmul.f32 %v850_v47, %v1228_v55  ;;  %v858_v7 = vmul.f32 %v850_v47, %v1232_v0 }
  0xd0   :  { %v347_v23 = vsel %vm246_vm9, %v345_v57, %v346_v19  ;;  %v733_v46 = vsel %vm246_vm9, %v731_v43, %v732_v27  ;;  %v437_v9 = vsel %vm388_vm10, %v435_v26, %v436_v58  ;;  %v820_v3 = vsel %vm388_vm10, %v818_v54, %v819_v51 }
  0xd1   :  { %v487_v53 = vrot.slane %v473_v52, 2  ;;  %v488_v59 = vrot.slane %v476_v1, 2  ;;  %v856_v4 = vmul.f32 %v849_v56, %v1354_v2  ;;  %v859_v55 = vmul.f32 %v849_v56, %v1356_v15 }
  0xd2   :  { %875 = vrot.lane.b32.xlu1 %v868_v12, %s997_s1  ;;  %v869_v38 = vrot.slane %v855_v31, 2  ;;  %v870_v0 = vrot.slane %v858_v7, 2 }
  0xd3   :  { %497 = vrot.lane.b32.xlu0 %v492_v45, %s997_s1  ;;  %v872_v29 = vrot.slane %v856_v4, 2  ;;  %v873_v32 = vrot.slane %v859_v55, 2  ;;  %v489_v39 = vsel %vm388_vm10, %v487_v53, %v488_v59 }
  0xd4   :  { %v871_v13 = vsel %vm388_vm10, %v869_v38, %v870_v0 }
  0xd5   :  { %v874_v2 = vsel %vm388_vm10, %v872_v29, %v873_v32 }
  0xd6   :  { %301 = vrot.lane.b32.xlu1 %v295_v18, %s998_s2 }
  0xd7   :  { %688 = vrot.lane.b32.xlu0 %v682_v28, %s998_s2 }
  0xda   :  { %353 = vrot.lane.b32.xlu1 %v347_v23, %s997_s1 }
  0xdb   :  { %739 = vrot.lane.b32.xlu0 %v733_v46, %s997_s1 }
  0xde   :  { %443 = vrot.lane.b32.xlu1 %v437_v9, %s998_s2 }
  0xdf   :  { %826 = vrot.lane.b32.xlu0 %v820_v3, %s998_s2 }
  0xe2   :  { %495 = vrot.lane.b32.xlu1 %v489_v39, %s997_s1 }
  0xe3   :  { %877 = vrot.lane.b32.xlu0 %v871_v13, %s997_s1 }
  0xe6   :  { %879 = vrot.lane.b32.xlu1 %v874_v2, %s997_s1 }
 0x111   :  { %v171_v15 = vpop.permute.xlu0 %170 }
 0x114   :  { %v564_v20 = vpop.permute.xlu1 %563 }
 0x115   :  { %v175_v6 = vpop.permute.xlu0 %174 }
 0x118   :  { %v568_v8 = vpop.permute.xlu1 %567 }
 0x119   :  { %v210_v16 = vpop.permute.xlu0 %209 }
 0x11c   :  { %v600_v14 = vpop.permute.xlu1 %599 }
 0x11d   :  { %v214_v21 = vpop.permute.xlu0 %213 }
 0x120   :  { %v604_v61 = vpop.permute.xlu1 %603 }
 0x121   :  { %v566_v36 = vpop.permute.xlu0 %565 }
 0x122   :  { %v569_v63 = vsel %vm176_vm12, %v564_v20, %v566_v36  ;;  %v570_v44 = vsel %vm176_vm12, %v566_v36, %v568_v8 }
 0x123   :  { %v573_v22 = vadd.f32 %v569_v63, %v1169_v34  ;;  %v574_v24 = vadd.f32 %v570_v44, %v1242_v50 }
 0x124   :  { %v173_v25 = vpop.permute.xlu1 %172 }
 0x125   :  { %v602_v12 = vpop.permute.xlu0 %601  ;;  %v177_v45 = vsel %vm176_vm12, %v171_v15, %v173_v25  ;;  %v178_v48 = vsel %vm176_vm12, %v173_v25, %v175_v6 }
 0x126   :  { %v605_v49 = vsel %vm198_vm11, %v600_v14, %v602_v12  ;;  %v606_v56 = vsel %vm198_vm11, %v602_v12, %v604_v61  ;;  %v181_v19 = vadd.f32 %v177_v45, %v1176_v42  ;;  %v182_v11 = vadd.f32 %v178_v48, %v1244_v10 }
 0x127   :  { %v609_v18 = vadd.f32 %v605_v49, %v573_v22  ;;  %v610_v57 = vadd.f32 %v606_v56, %v574_v24 }
 0x128   :  { %v212_v40 = vpop.permute.xlu1 %211 }
 0x129   :  { %v300_v34 = vpop.permute.xlu0 %299  ;;  %v643_v50 = vadd.f32 %v1254_v33, %v609_v18  ;;  %v644_v43 = vadd.f32 %v1257_v41, %v610_v57  ;;  %v215_v27 = vsel %vm198_vm11, %v210_v16, %v212_v40  ;;  %v216_v35 = vsel %vm198_vm11, %v212_v40, %v214_v21 }
 0x12a   :  { %v219_v28 = vadd.f32 %v215_v27, %v181_v19  ;;  %v220_v47 = vadd.f32 %v216_v35, %v182_v11 }
 0x12c   :  { %v687_v26 = vpop.permute.xlu1 %686  ;;  %v255_v54 = vadd.f32 %v1202_v60, %v219_v28  ;;  %v256_v42 = vadd.f32 %v1247_v30, %v220_v47 }
 0x12d   :  { %v304_v58 = vpop.permute.xlu0 %303 }
 0x130   :  { %v691_v51 = vpop.permute.xlu1 %690 }
 0x131   :  { %v352_v10 = vpop.permute.xlu0 %351 }
 0x134   :  { %v738_v52 = vpop.permute.xlu1 %737 }
 0x135   :  { %v356_v1 = vpop.permute.xlu0 %355 }
 0x138   :  { %v742_v31 = vpop.permute.xlu1 %741 }
 0x139   :  { %v442_v33 = vpop.permute.xlu0 %441 }
 0x13c   :  { %v825_v7 = vpop.permute.xlu1 %824 }
 0x13d   :  { %v446_v41 = vpop.permute.xlu0 %445 }
 0x140   :  { %v829_v23 = vpop.permute.xlu1 %828 }
 0x141   :  { %v494_v46 = vpop.permute.xlu0 %493 }
 0x144   :  { %v876_v53 = vpop.permute.xlu1 %875 }
 0x145   :  { %v498_v59 = vpop.permute.xlu0 %497 }
 0x148   :  { %v302_v9 = vpop.permute.xlu1 %301 }
 0x149   :  { %v689_v3 = vpop.permute.xlu0 %688  ;;  %v305_v4 = vsel %vm176_vm12, %v300_v34, %v302_v9  ;;  %v306_v60 = vsel %vm176_vm12, %v302_v9, %v304_v58 }
 0x14a   :  { %v692_v30 = vsel %vm176_vm12, %v687_v26, %v689_v3  ;;  %v693_v55 = vsel %vm176_vm12, %v689_v3, %v691_v51  ;;  %v309_v38 = vadd.f32 %v305_v4, %v255_v54  ;;  %v310_v0 = vadd.f32 %v306_v60, %v256_v42 }
 0x14b   :  { %v696_v29 = vadd.f32 %v692_v30, %v643_v50  ;;  %v697_v32 = vadd.f32 %v693_v55, %v644_v43 }
 0x14c   :  { %v354_v39 = vpop.permute.xlu1 %353 }
 0x14d   :  { %v740_v13 = vpop.permute.xlu0 %739  ;;  %v357_v2 = vsel %vm198_vm11, %v352_v10, %v354_v39  ;;  %v358_v15 = vsel %vm198_vm11, %v354_v39, %v356_v1 }
 0x14e   :  { %v743_v20 = vsel %vm198_vm11, %v738_v52, %v740_v13  ;;  %v744_v6 = vsel %vm198_vm11, %v740_v13, %v742_v31  ;;  %v361_v8 = vadd.f32 %v357_v2, %v309_v38  ;;  %v362_v16 = vadd.f32 %v358_v15, %v310_v0 }
 0x14f   :  { %v747_v14 = vadd.f32 %v743_v20, %v696_v29  ;;  %v748_v21 = vadd.f32 %v744_v6, %v697_v32 }
 0x150   :  { %v444_v61 = vpop.permute.xlu1 %443  ;;  %v397_v36 = vadd.f32 %v1270_v5, %v361_v8  ;;  %v398_v63 = vadd.f32 %v1260_v62, %v362_v16 }
 0x151   :  { %v781_v44 = vadd.f32 %v1278_v37, %v747_v14  ;;  %v782_v22 = vadd.f32 %v1286_v17, %v748_v21  ;;  %v827_v24 = vpop.permute.xlu0 %826  ;;  %v447_v25 = vsel %vm176_vm12, %v442_v33, %v444_v61  ;;  %v448_v12 = vsel %vm176_vm12, %v444_v61, %v446_v41 }
 0x152   :  { %v830_v45 = vsel %vm176_vm12, %v825_v7, %v827_v24  ;;  %v451_v48 = vadd.f32 %v447_v25, %v397_v36  ;;  %v452_v49 = vadd.f32 %v448_v12, %v398_v63  ;;  %v831_v5 = vsel %vm176_vm12, %v827_v24, %v829_v23 }
 0x153   :  { %v834_v56 = vadd.f32 %v830_v45, %v781_v44  ;;  %v835_v34 = vadd.f32 %v831_v5, %v782_v22 }
 0x154   :  { %v496_v18 = vpop.permute.xlu1 %495 }
 0x155   :  { %v878_v57 = vpop.permute.xlu0 %877  ;;  %v499_v62 = vsel %vm198_vm11, %v494_v46, %v496_v18  ;;  %v500_v37 = vsel %vm198_vm11, %v496_v18, %v498_v59 }
 0x156   :  { %v881_v17 = vsel %vm198_vm11, %v876_v53, %v878_v57  ;;  %v503_v19 = vadd.f32 %v499_v62, %v451_v48  ;;  %v504_v11 = vadd.f32 %v500_v37, %v452_v49 }
 0x157   :  { %v885_v40 = vadd.f32 %v881_v17, %v834_v56 }
 0x158   :  { %505 = vst [vmem:[#allocation8] sm:$0xff] %v503_v19  ;;  %506 = vst [vmem:[#allocation8 + $0x8] sm:$0xff] %v504_v11  ;;  %v880_v50 = vpop.permute.xlu1 %879 }
 0x159   :  { %888 = vst [vmem:[#allocation8 + $0x10] sm:$0xff] %v885_v40  ;;  %v882_v43 = vsel %vm198_vm11, %v878_v57, %v880_v50 }
 0x15a   :  { %v886_v27 = vadd.f32 %v882_v43, %v835_v34 }
 0x15c   :  { %889 = vst [vmem:[#allocation8 + $0x18] sm:$0xff] %v886_v27 }
 0x15d   :  { %974 = shalt.err (!%p971_p0)
}
 0x15e   :  { %901 = dma.vmem_to_hbm [thread:$0]  %s896_s4, 512, %s1490_s3, [#allocation5], %s990_s15, %s990_s15, %s991_s16  }
 0x15f   :  { %987 = dma.done.wait [#allocation5], 512  }
 0x160   :  { %988 = vsyncadd [#allocation5], 4294966784 }
 0x161   :  { %905 = vsyncpa [#allocation4], 1 }
 0x162   :  { %906 = vsyncpa [#allocation7], 1 }
 0x163   :  { %907 = vsyncpa [#allocation5], 1 }

</bundles_post_ra>
